<compile_context>
chip_gen: v6e
topology: v6e:2x2x1
jax: 0.10.0
libtpu: 0.0.40
codegen_flags: <defaults>
</compile_context>

<pallas_src>
import functools

import jax
import jax.numpy as jnp
from jax.experimental import pallas as pl
from jax.experimental.pallas import tpu as pltpu

IMAGENET_MEAN = jnp.array([0.485, 0.456, 0.406], dtype=jnp.float32)
IMAGENET_STD = jnp.array([0.229, 0.224, 0.225], dtype=jnp.float32)

VISION_FEAT_DIM = 1408     # EfficientNet-B2 feature width
VISION_FINAL_DIM = 500     # vision_mlp output width (PyTorch module)
PADDED_VISION_DIM = 512    # lane-dense padding (multiple of 128); pad cols are zero
FINAL_DIM = 256
POSE_DIM = 12              # multi_poses.view(B, -1) with (3, 4) pose matrices
POSE_PAD = 128             # lane-dense padding for the pose vector / W1 pose rows


# ----------------------------------------------------------------------------
# Small helpers
# ----------------------------------------------------------------------------
def _round_up(x, m):
    return (x + m - 1) // m * m


def _cdiv(a, b):
    return -(-a // b)


def _chip_generation():
    """Best-effort TPU generation from device_kind; 0 if unknown."""
    try:
        kind = jax.devices()[0].device_kind.lower()
    except Exception:
        return 0
    for g in (7, 6, 5, 4, 3):
        if f"v{g}" in kind:
            return g
    return 0


def _backbone_stream_dtype(gen):
    """Storage dtype of the streamed backbone weight (per the perf review).

    The tile is dequantized to bf16 inside the kernel, so no native int8/fp8
    MXU op is emitted; the dtype only controls HBM bytes.
    """
    if gen in (5, 6):
        return jnp.int8             # v5e/v6e: halve the dominant HBM stream
    if gen >= 7:
        return jnp.float8_e4m3fn    # v7x: no integer MXU path; fp8 keeps the 2x byte win
    return jnp.bfloat16             # unknown / older generations: safe fallback


def _vmem_limit_bytes(gen):
    """Generation-aware VMEM budget (v7x: 64 MiB/TC, v5e/v6e: 128 MiB)."""
    cap = (64 << 20) if gen >= 7 else (128 << 20)
    try:
        info_cap = getattr(pltpu.get_tpu_info(), "vmem_capacity_bytes", None)
        if info_cap:
            cap = int(info_cap)
    except Exception:
        pass
    return int(min(cap - cap // 4, 100 << 20))


def _pick_tk(K, tf, wb_itemsize, vmem_limit, x_bytes):
    """K-tile: biggest that fits, then re-sized so it (nearly) divides K."""
    # Per row of a K-tile: double-buffered quantized tile (2 * itemsize bytes)
    # plus the in-kernel dequantized bf16 copy (2 bytes).
    per_row = tf * (2 * wb_itemsize + 2)
    budget = vmem_limit - 2 * x_bytes - (4 << 20)   # x (double-buffered) + slack
    budget = max(budget, 2 << 20)
    tk_max = max(128, (budget // per_row) // 128 * 128)
    n_k = _cdiv(K, tk_max)            # pick the step count first ...
    return int(_round_up(_cdiv(K, n_k), 128))   # ... so tk*n_k barely exceeds K


def _quantize_columns(w, dtype):
    """Per-output-channel symmetric quantization of a (K, F) f32 weight."""
    if dtype == jnp.bfloat16:
        return w.astype(jnp.bfloat16), jnp.ones((1, w.shape[1]), jnp.float32)
    absmax = jnp.max(jnp.abs(w), axis=0, keepdims=True)
    qmax = 127.0 if dtype == jnp.int8 else 448.0        # e4m3fn max finite = 448
    scale = jnp.where(absmax > 0.0, absmax / qmax, 1.0).astype(jnp.float32)
    q = w / scale
    if dtype == jnp.int8:
        q = jnp.clip(jnp.round(q), -qmax, qmax)
    return q.astype(dtype), scale


# ----------------------------------------------------------------------------
# Kernels
# ----------------------------------------------------------------------------
def _backbone_kernel(x_ref, wb_ref, bb_ref, sc_ref, feat_ref, acc_ref, *, tk):
    """Streamed, quantized backbone GEMM: feat = relu((x @ Wq) * scale + b).

    Grid = (n_f, n_k): n_f "parallel" blocks of the 1408-wide output (2 on
    v7x so both TensorCores stream), n_k "arbitrary" K-reduction steps.
    """
    # TODO(synk): the pretrained EfficientNet-B2 backbone has no clean Pallas
    # equivalent; it is replaced by a deterministic linear patch embedding
    # (+ReLU) producing the same 1408-dim feature the torchvision model emits.
    k = pl.program_id(1)

    @pl.when(k == 0)
    def _():
        acc_ref[...] = jnp.zeros_like(acc_ref)

    off = pl.multiple_of(k * tk, 128)
    xk = x_ref[:, pl.ds(off, tk)]                 # (B, tk) bf16, x is VMEM-resident
    wk = wb_ref[...].astype(jnp.bfloat16)         # dequant int8/fp8 -> bf16 (no-op for bf16)
    acc_ref[...] += jnp.dot(xk, wk, preferred_element_type=jnp.float32)

    @pl.when(k == pl.num_programs(1) - 1)
    def _():
        # Per-output-channel dequant scale folded in once, post-accumulation.
        feat_ref[...] = jnp.maximum(acc_ref[...] * sc_ref[...] + bb_ref[...], 0.0)


def _tail_kernel(feat_ref, pose_ref, wv_ref, bv_ref,
                 w1a_ref, w1b_ref, b1_ref, w2_ref, b2_ref, out_ref):
    """vision_mlp -> mlp1(cat) -> mean over views -> mlp2 -> tanh (one shot)."""
    # vision_mlp: 1408(padded) -> 512 (columns 500..511 zero-padded)
    img = (jnp.dot(feat_ref[...].astype(jnp.bfloat16), wv_ref[...],
                   preferred_element_type=jnp.float32) + bv_ref[...])     # (B, 512)

    # mlp1 on cat([img_feat, poses], dim=1): split matmul avoids the concat
    h1 = (jnp.dot(img, w1a_ref[...], preferred_element_type=jnp.float32)
          + jnp.dot(pose_ref[...], w1b_ref[...], preferred_element_type=jnp.float32)
          + b1_ref[...])                                                  # (B, 256)

    # Mean over the view/batch dim (keepdim).  NOTE: the full view dim B is
    # always in this single block (grid size 1), so this is the true mean.
    h1_mean = jnp.mean(h1, axis=0, keepdims=True)                         # (1, 256)

    h2 = jnp.dot(h1_mean, w2_ref[...], preferred_element_type=jnp.float32) + b2_ref[...]
    out_ref[...] = jnp.tanh(h2)                                           # (1, 256)


# ----------------------------------------------------------------------------
# Parameter construction / preparation
# ----------------------------------------------------------------------------
def init_params(key, pixel_dim):
    """Deterministic torch.nn.Linear-style init (uniform +/- 1/sqrt(fan_in))."""
    def linear(k, fan_in, fan_out):
        kw, kb = jax.random.split(k)
        bound = 1.0 / jnp.sqrt(jnp.float32(fan_in))
        w = jax.random.uniform(kw, (fan_in, fan_out), jnp.float32, -bound, bound)
        b = jax.random.uniform(kb, (1, fan_out), jnp.float32, -bound, bound)
        return w, b

    k0, k1, k2, k3 = jax.random.split(key, 4)
    wb, bb = linear(k0, pixel_dim, VISION_FEAT_DIM)               # backbone stand-in
    wv, bv = linear(k1, VISION_FEAT_DIM, VISION_FINAL_DIM)        # vision_mlp
    w1, b1 = linear(k2, VISION_FINAL_DIM + POSE_DIM, FINAL_DIM)   # mlp1
    w2, b2 = linear(k3, FINAL_DIM, FINAL_DIM)                     # mlp2
    return {
        "wb": wb, "bb": bb,
        "wv": wv, "bv": bv,
        "w1a": w1[:VISION_FINAL_DIM, :],   # acts on img_features
        "w1b": w1[VISION_FINAL_DIM:, :],   # acts on poses
        "b1": b1,
        "w2": w2, "b2": b2,
    }


def prepare_params(params, C, H, W, num_views=2, tk=None):
    """Offline kernel-side weight prep.

      * fold ImageNet mean/std normalization and NCHW->NHWC permutation into wb/bb,
      * per-output-channel quantize wb (int8 on v5e/v6e, fp8 on v7x, bf16 fallback),
      * pad K to n_k*tk (tk chosen so the padding is < 128 rows per step),
      * pad F to 1536 only when splitting across v7x's two TensorCores,
      * zero-pad vision dims 500 -> 512 and pose dims 12 -> 128 for lane-dense layout.
    """
    gen = _chip_generation()
    wb_dtype = _backbone_stream_dtype(gen)
    n_f = 2 if gen >= 7 else 1                       # split F across v7x's two TCs only
    f_pad = _round_up(VISION_FEAT_DIM, 128 * n_f)    # 1408 (n_f=1) or 1536 (n_f=2)
    tf = f_pad // n_f
    vmem_limit = _vmem_limit_bytes(gen)

    K = C * H * W
    x_bytes = num_views * _round_up(K, 128) * 2      # resident bf16 activations
    if tk is None:
        tk = _pick_tk(K, tf, jnp.dtype(wb_dtype).itemsize, vmem_limit, x_bytes)
    n_k = _cdiv(K, tk)
    kp = n_k * tk

    F = VISION_FEAT_DIM
    inv_std = 1.0 / IMAGENET_STD
    wb4 = params["wb"].reshape(H, W, C, F)                        # NHWC-flat row order
    bb = params["bb"] - jnp.einsum("c,hwcf->f", IMAGENET_MEAN * inv_std, wb4)[None, :]
    wb4 = wb4 * inv_std[None, None, :, None]                      # fold 1/std
    wbk = jnp.transpose(wb4, (2, 0, 1, 3)).reshape(K, F)          # rows in NCHW-flat order
    wbk = jnp.pad(wbk, ((0, kp - K), (0, f_pad - F)))
    wq, wscale = _quantize_columns(wbk, wb_dtype)                 # per-column scale
    bb = jnp.pad(bb, ((0, 0), (0, f_pad - F)))

    pad_v = PADDED_VISION_DIM - VISION_FINAL_DIM
    wv = jnp.pad(params["wv"], ((0, f_pad - F), (0, pad_v))).astype(jnp.bfloat16)
    bv = jnp.pad(params["bv"], ((0, 0), (0, pad_v)))
    w1a = jnp.pad(params["w1a"], ((0, pad_v), (0, 0)))
    w1b = jnp.pad(params["w1b"], ((0, POSE_PAD - POSE_DIM), (0, 0)))

    return {
        "wb": wq, "wscale": wscale, "bb": bb,
        "wv": wv, "bv": bv, "w1a": w1a, "w1b": w1b, "b1": params["b1"],
        "w2": params["w2"], "b2": params["b2"],
        "tk": int(tk), "kp": int(kp), "n_f": int(n_f), "f_pad": int(f_pad),
        "vmem_limit": int(vmem_limit),
    }


# ----------------------------------------------------------------------------
# Forward pass
# ----------------------------------------------------------------------------
def multi_view_encoder(multi_images_nchw, multi_poses, prep):
    B, C, H, W = multi_images_nchw.shape
    K = C * H * W
    tk, kp = prep["tk"], prep["kp"]
    n_f, f_pad = prep["n_f"], prep["f_pad"]
    tf = f_pad // n_f
    n_k = kp // tk

    # TODO(synk): the torchvision bicubic resize + 288 center-crop preprocessing
    # is omitted; inputs are consumed at their native spatial resolution.
    # Raw NCHW-flattened pixels: normalization + layout permutation are folded
    # into wb/bb, so no transpose / elementwise preprocessing here.
    x = multi_images_nchw.reshape(B, K).astype(jnp.bfloat16)
    if kp > K:
        x = jnp.pad(x, ((0, 0), (0, kp - K)))
    poses = jnp.pad(multi_poses.reshape(B, -1).astype(jnp.float32),
                    ((0, 0), (0, POSE_PAD - POSE_DIM)))                  # (B, 128)

    # ---- Main streamed GEMM: the quantized wb tile is the only per-step DMA.
    feat = pl.pallas_call(
        functools.partial(_backbone_kernel, tk=tk),
        out_shape=jax.ShapeDtypeStruct((B, f_pad), jnp.float32),
        grid=(n_f, n_k),
        in_specs=[
            pl.BlockSpec((B, kp), lambda f, k: (0, 0)),     # x: fully VMEM-resident
            pl.BlockSpec((tk, tf), lambda f, k: (k, f)),    # wb: streamed K-tiles
            pl.BlockSpec((1, tf), lambda f, k: (0, f)),     # bb
            pl.BlockSpec((1, tf), lambda f, k: (0, f)),     # per-channel dequant scale
        ],
        out_specs=pl.BlockSpec((B, tf), lambda f, k: (0, f)),
        scratch_shapes=[pltpu.VMEM((B, tf), jnp.float32)],
        compiler_params=pltpu.CompilerParams(
            dimension_semantics=("parallel", "arbitrary"),   # F parallel, K reduction
            vmem_limit_bytes=prep["vmem_limit"]),
    )(x, prep["wb"], prep["bb"], prep["wscale"])

    # ---- Tiny tail (<0.5 MFLOP), one-shot second call; everything resident.
    def full_spec(a):
        nd = a.ndim
        return pl.BlockSpec(a.shape, lambda i, _nd=nd: (0,) * _nd)

    tail_args = (feat, poses, prep["wv"], prep["bv"], prep["w1a"], prep["w1b"],
                 prep["b1"], prep["w2"], prep["b2"])
    out = pl.pallas_call(
        _tail_kernel,
        out_shape=jax.ShapeDtypeStruct((1, FINAL_DIM), jnp.float32),
        grid=(1,),
        in_specs=[full_spec(a) for a in tail_args],
        out_specs=pl.BlockSpec((1, FINAL_DIM), lambda i: (0, 0)),
        compiler_params=pltpu.CompilerParams(
            dimension_semantics=("arbitrary",)),
    )(*tail_args)
    return out


# ----------------------------------------------------------------------------
# Pure-JAX reference (mirrors the original module's order of operations)
# ----------------------------------------------------------------------------
def _reference(multi_images_nchw, multi_poses, params):
    B, C, H, W = multi_images_nchw.shape
    x = jnp.transpose(multi_images_nchw, (0, 2, 3, 1)).astype(jnp.float32)  # NHWC
    x = (x - IMAGENET_MEAN) / IMAGENET_STD
    x = x.reshape(B, H * W * C)
    poses = multi_poses.reshape(B, -1).astype(jnp.float32)
    feat = jnp.maximum(x @ params["wb"] + params["bb"], 0.0)
    img_feat = feat @ params["wv"] + params["bv"]
    h1 = img_feat @ params["w1a"] + poses @ params["w1b"] + params["b1"]
    h1 = jnp.mean(h1, axis=0, keepdims=True)
    return jnp.tanh(h1 @ params["w2"] + params["b2"])


if __name__ == "__main__":
    key = jax.random.PRNGKey(0)
    k_img, k_pose, k_param = jax.random.split(key, 3)

    B, C, H, W = 2, 3, 16, 16                          # 2 views of small RGB images
    multi_images = jax.random.uniform(k_img, (B, C, H, W), jnp.float32)   # in [0, 1]
    multi_poses = jax.random.normal(k_pose, (B, 3, 4), jnp.float32)       # (B, 3, 4) poses

    params = init_params(k_param, H * W * C)
    # tk=256 forces a 3-step K grid at this demo size so the streamed/accumulate
    # path is exercised; pass tk=None to auto-size the tile from the VMEM budget.
    prep = prepare_params(params, C, H, W, num_views=B, tk=256)

    out = multi_view_encoder(multi_images, multi_poses, prep)
    out = jax.block_until_ready(out)

    ref = _reference(multi_images, multi_poses, params)
    assert out.shape == (1, FINAL_DIM), out.shape
    assert bool(jnp.all(jnp.isfinite(out)))
    # Tolerance covers weight-only int8/fp8 quantization of the streamed
    # backbone weight (f32 reference); observed error is well below this.
    assert bool(jnp.allclose(out, ref, atol=4e-2, rtol=4e-2)), (
        "mismatch vs reference, max abs diff = %f"
        % float(jnp.max(jnp.abs(out - ref))))

    print("KERNEL_OK")
</pallas_src>

<mosaic_0001>
module attributes {stable_mosaic.version = 11 : i64} {
  func.func @_backbone_kernel(%arg0: i32, %arg1: i32, %arg2: memref<2x768xbf16, #tpu.memory_space<vmem>>, %arg3: memref<256x1408xbf16, #tpu.memory_space<vmem>>, %arg4: memref<1x1408xf32, #tpu.memory_space<vmem>>, %arg5: memref<1x1408xf32, #tpu.memory_space<vmem>>, %arg6: memref<2x1408xf32, #tpu.memory_space<vmem>>, %arg7: memref<2x1408xf32, #tpu.memory_space<vmem>>) attributes {dimension_semantics = [#tpu.dimension_semantics<parallel>, #tpu.dimension_semantics<arbitrary>], iteration_bounds = array<i64: 1, 3>, scalar_prefetch = 0 : i64, scratch_operands = 1 : i64, tpu.core_type = #tpu.core_type<tc>, window_params = [{pipeline_mode = #tpu.pipeline_mode<synchronous>, transform_indices = @transform_0, window_bounds = array<i64: 2, 768>}, {transform_indices = @transform_1, window_bounds = array<i64: 256, 1408>}, {transform_indices = @transform_2, window_bounds = array<i64: 1, 1408>}, {transform_indices = @transform_3, window_bounds = array<i64: 1, 1408>}, {transform_indices = @transform_4, window_bounds = array<i64: 2, 1408>}]} {
    %c0_i32 = arith.constant 0 : i32
    %0 = arith.cmpi eq, %arg1, %c0_i32 : i32
    %1 = arith.extui %0 : i1 to i32
    %c0_i32_0 = arith.constant 0 : i32
    %2 = arith.cmpi ne, %1, %c0_i32_0 : i32
    scf.if %2 {
      %cst_8 = arith.constant 0.000000e+00 : f32
      %15 = vector.broadcast %cst_8 : f32 to vector<2x1408xf32>
      %c0_9 = arith.constant 0 : index
      %c0_10 = arith.constant 0 : index
      %16 = vector.load %arg7[%c0_9, %c0_10] : memref<2x1408xf32, #tpu.memory_space<vmem>>, vector<2x1408xf32>
      tpu.vector_store %arg7[%c0_9, %c0_10], %15 {strides = array<i32>} : memref<2x1408xf32, #tpu.memory_space<vmem>>, vector<2x1408xf32>,
    } else {
    }
    %c256_i32 = arith.constant 256 : i32
    %3 = arith.muli %arg1, %c256_i32 : i32
    %4 = tpu.assume_multiple %3, 128 : i32
    %c0 = arith.constant 0 : index
    %5 = arith.index_cast %4 : i32 to index
    %6 = vector.load %arg2[%c0, %5] : memref<2x768xbf16, #tpu.memory_space<vmem>>, vector<2x256xbf16>
    %c0_1 = arith.constant 0 : index
    %c0_2 = arith.constant 0 : index
    %7 = vector.load %arg3[%c0_1, %c0_2] : memref<256x1408xbf16, #tpu.memory_space<vmem>>, vector<256x1408xbf16>
    %c0_3 = arith.constant 0 : index
    %c0_4 = arith.constant 0 : index
    %8 = vector.load %arg7[%c0_3, %c0_4] : memref<2x1408xf32, #tpu.memory_space<vmem>>, vector<2x1408xf32>
    %cst = arith.constant dense<0.000000e+00> : vector<2x1408xf32>
    %9 = tpu.matmul %6, %7, %cst {dimension_numbers = #tpu.dot_dimension_numbers<[1], [0], [0], [1], [0, 0, 1, 1], [], []>} : vector<2x256xbf16>, vector<256x1408xbf16>, vector<2x1408xf32> -> vector<2x1408xf32>
    %10 = arith.addf %8, %9 : vector<2x1408xf32>
    %c0_5 = arith.constant 0 : index
    %c0_6 = arith.constant 0 : index
    %11 = vector.load %arg7[%c0_5, %c0_6] : memref<2x1408xf32, #tpu.memory_space<vmem>>, vector<2x1408xf32>
    tpu.vector_store %arg7[%c0_5, %c0_6], %10 {strides = array<i32>} : memref<2x1408xf32, #tpu.memory_space<vmem>>, vector<2x1408xf32>,
    %c2_i32 = arith.constant 2 : i32
    %12 = arith.cmpi eq, %arg1, %c2_i32 : i32
    %13 = arith.extui %12 : i1 to i32
    %c0_i32_7 = arith.constant 0 : i32
    %14 = arith.cmpi ne, %13, %c0_i32_7 : i32
    scf.if %14 {
      %c0_8 = arith.constant 0 : index
      %c0_9 = arith.constant 0 : index
      %15 = vector.load %arg7[%c0_8, %c0_9] : memref<2x1408xf32, #tpu.memory_space<vmem>>, vector<2x1408xf32>
      %c0_10 = arith.constant 0 : index
      %c0_11 = arith.constant 0 : index
      %16 = vector.load %arg5[%c0_10, %c0_11] : memref<1x1408xf32, #tpu.memory_space<vmem>>, vector<1x1408xf32>
      %17 = vector.broadcast %16 : vector<1x1408xf32> to vector<2x1408xf32>
      %18 = arith.mulf %15, %17 : vector<2x1408xf32>
      %c0_12 = arith.constant 0 : index
      %c0_13 = arith.constant 0 : index
      %19 = vector.load %arg4[%c0_12, %c0_13] : memref<1x1408xf32, #tpu.memory_space<vmem>>, vector<1x1408xf32>
      %20 = vector.broadcast %19 : vector<1x1408xf32> to vector<2x1408xf32>
      %21 = arith.addf %18, %20 : vector<2x1408xf32>
      %cst_14 = arith.constant 0.000000e+00 : f32
      %22 = vector.broadcast %cst_14 : f32 to vector<2x1408xf32>
      %23 = arith.maximumf %21, %22 : vector<2x1408xf32>
      %c0_15 = arith.constant 0 : index
      %c0_16 = arith.constant 0 : index
      %24 = vector.load %arg6[%c0_15, %c0_16] : memref<2x1408xf32, #tpu.memory_space<vmem>>, vector<2x1408xf32>
      tpu.vector_store %arg6[%c0_15, %c0_16], %23 {strides = array<i32>} : memref<2x1408xf32, #tpu.memory_space<vmem>>, vector<2x1408xf32>,
    } else {
    }
    return
  }
  func.func @transform_0(%arg0: i32, %arg1: i32) -> (i32, i32) {
    %c0_i32 = arith.constant 0 : i32
    %c0_i32_0 = arith.constant 0 : i32
    %c0_i32_1 = arith.constant 0 : i32
    return %c0_i32, %c0_i32_0 : i32, i32
  }
  func.func @transform_1(%arg0: i32, %arg1: i32) -> (i32, i32) {
    %c0_i32 = arith.constant 0 : i32
    return %arg1, %arg0 : i32, i32
  }
  func.func @transform_2(%arg0: i32, %arg1: i32) -> (i32, i32) {
    %c0_i32 = arith.constant 0 : i32
    %c0_i32_0 = arith.constant 0 : i32
    return %c0_i32, %arg0 : i32, i32
  }
  func.func @transform_3(%arg0: i32, %arg1: i32) -> (i32, i32) {
    %c0_i32 = arith.constant 0 : i32
    %c0_i32_0 = arith.constant 0 : i32
    return %c0_i32, %arg0 : i32, i32
  }
  func.func @transform_4(%arg0: i32, %arg1: i32) -> (i32, i32) {
    %c0_i32 = arith.constant 0 : i32
    %c0_i32_0 = arith.constant 0 : i32
    return %c0_i32, %arg0 : i32, i32
  }
}

</mosaic_0001>

<bundles_post_ra>
// kernel: tpu_custom_call.1
= control target key start
LH: loop header
LB: loop body
LE: loop exit
PB: predicated region body
PF: predicated region fallthrough
CT: control target
= control target key end

     0   :  { %9 = vsyncpa [#allocation4], 0  ;;  %s3262_s0 = inlined_call_operand.hbm [shape: bf16[2,768], index: 0, kind: input, shape index: {}]   ;;  %s3263_s1 = inlined_call_operand.hbm [shape: bf16[768,1408], index: 1, kind: input, shape index: {}]   ;;  %s3264_s2 = inlined_call_operand.hbm [shape: f32[1,1408], index: 2, kind: input, shape index: {}]   ;;  %s3265_s3 = inlined_call_operand.hbm [shape: f32[1,1408], index: 3, kind: input, shape index: {}]   ;;  %s3266_s4 = inlined_call_operand.hbm [shape: f32[2,1408], index: 4, kind: output, shape index: {}]  }
   0x1   :  { %10 = vsyncpa [#allocation7], 0 }
   0x2   :  { %12 = vsyncpa [#allocation7 + $0x1], 0 }
   0x3   :  { %13 = vsyncpa [#allocation10], 0 }
   0x4   :  { %14 = vsyncpa [#allocation5], 0  ;;  %s2869_s15 = smov 0   ;;  %s2871_s16 = smov 0  }
   0x5   :  { %s2873_s17 = smov 0   ;;  %s2875_s18 = smov 0  }
   0x6   :  { %s2877_s19 = smov 0   ;;  %s2879_s20 = smov 0  }
   0x7 LB: > { %s2898_s21 = sadd.s32 4294967295, %s2832_s20   ;;  %s62_s22 = sadd.s32 1, %s2820_s17  ;;  %s2832_s20 = sphi %s2879_s20, %s20_s20   ;;  %s2828_s19 = sphi %s2877_s19, %s3286_s19   ;;  %s2824_s18 = sphi %s2875_s18, %s3285_s18   ;;  %s2820_s17 = sphi %s2873_s17, %s3284_s17   ;;  %s2816_s16 = sphi %s2871_s16, %s3283_s16   ;;  %s2812_s15 = sphi %s2869_s15, %s3282_s15  }
   0x8   : > { %p69_p0 = scmp.ne.s32.totalorder %s2820_s17, %s2816_s16  ;;  %p70_p1 = scmp.eq.s32.totalorder %s2832_s20, 0 }
   0x9   : > { %p75_p2 = scmp.ne.s32.totalorder %s2816_s16, %s2812_s15  ;;  %p3267_p3 = scmp.eq.s32.totalorder %s2898_s21, 0 }
   0xa   : > { %p71_p4 = por %p70_p1, %p69_p0  ;;  %p2061_p5 = scmp.ge.s32.totalorder %s2832_s20, 1 }
   0xb   : > { %p2909_p6 = por %p3267_p3, %p75_p2  ;;  %p164_p7 = scmp.lt.s32.totalorder %s2832_s20, 4 }
   0xc   : > { %s2834_s25 = smov [#allocation8]   ;;  %p2317_p10 = scmp.lt.s32.totalorder %s2832_s20, 3 }
   0xd   : > { %s3270_s23 = scalar_select %p2909_p6, 1, 0 }
   0xe   : > { %p2914_p8 = pnand %p2061_p5, %p164_p7  ;;  %s191_s26 = sshll.u32 %s2834_s25, 4  ;;  %s192_s26 = int_to_ptr.vmem [resolvable:$true] %s191_s26 }
   0xf   : > { %p2927_p12 = pnand %p2317_p10, %p71_p4  ;;  %s2835_s29 = smov [#allocation3]  }
  0x10   : > { %s3271_s24 = scalar_select %p2914_p8, 1, 0 }
  0x11   : > { %p2300_p9 = pneg %p2914_p8  ;;  %s177_s30 = sshll.u32 %s2835_s29, 4  ;;  %s178_s30 = int_to_ptr.vmem [resolvable:$true] %s177_s30 }
  0x12   : > { %s2647_s5 = scalar_lea.vmem %s192_s26, 176  ;;  %s2654_s6 = scalar_lea.vmem %s192_s26, 192 }
  0x13   : > { %p2923_p11 = pnand %p2300_p9, %p3267_p3  ;;  %p2648_p0 = scmp.ne.s32.totalorder %s192_s26, %s2647_s5 }
  0x14   : > { %p2655_p5 = scmp.lt.s32.totalorder %s192_s26, %s192_s26  ;;  %p2656_p7 = scmp.lt.s32.totalorder %s2654_s6, %s2647_s5 }
  0x15   : > { %p2638_p13 = pneg %p2923_p11 }
  0x16   : > { %p2657_p9 = por %p2656_p7, %p2655_p5 }
  0x17   : > { %p2650_p1 = pnand %p2648_p0, %p2638_p13 }
  0x19   : > { %p2651_p2 = pneg %p2650_p1 }
  0x1b   : > { %p2658_p3 = pnand %p2657_p9, %p2651_p2 }
  0x1d   : > { %2661 = shalt.err (!%p2658_p3)
}
  0x1e   : > { %2306 = dma.hbm_to_vmem [thread:$0]  (!%p2923_p11), %s3264_s2, 176, %s192_s26, [#allocation7]  }
  0x1f   : > { %s2673_s9 = scalar_lea.vmem %s178_s30, 96  ;;  %p2681_p1 = scmp.lt.s32.totalorder %s178_s30, %s178_s30 }
  0x20   : > { %p2674_p4 = scmp.ne.s32.totalorder %s178_s30, %s2673_s9  ;;  %p2682_p6 = scmp.lt.s32.totalorder %s2673_s9, %s2673_s9 }
  0x22   : > { %p2676_p10 = pnand %p2674_p4, %p2638_p13  ;;  %p2683_p8 = por %p2682_p6, %p2681_p1 }
  0x24   : > { %p2677_p0 = pneg %p2676_p10 }
  0x26   : > { %p2684_p5 = pnand %p2683_p8, %p2677_p0 }
  0x28   : > { %2687 = shalt.err (!%p2684_p5)
}
  0x29   : > { %2303 = dma.hbm_to_vmem [thread:$0]  (!%p2923_p11), %s3262_s0, 96, %s178_s30, [#allocation4]  }
  0x2a   : > { %s2836_s12 = smov [#allocation9]  }
  0x2b   : > { %s205_s13 = sshll.u32 %s2836_s12, 4  ;;  %s206_s13 = int_to_ptr.vmem [resolvable:$true] %s205_s13 }
  0x2c   : > { %s2699_s14 = scalar_lea.vmem %s206_s13, 176  ;;  %s2706_s15 = scalar_lea.vmem %s206_s13, 192 }
  0x2d   : > { %p2700_p3 = scmp.ne.s32.totalorder %s206_s13, %s2699_s14  ;;  %p2707_p6 = scmp.lt.s32.totalorder %s206_s13, %s206_s13 }
  0x2e   : > { %p2708_p8 = scmp.lt.s32.totalorder %s2706_s15, %s2699_s14 }
  0x2f   : > { %p2702_p2 = pnand %p2700_p3, %p2638_p13 }
  0x30   : > { %p2709_p9 = por %p2708_p8, %p2707_p6 }
  0x31   : > { %p2703_p7 = pneg %p2702_p2 }
  0x33   : > { %p2710_p4 = pnand %p2709_p9, %p2703_p7 }
  0x35   : > { %2713 = shalt.err (!%p2710_p4)
}
  0x36   : > { %2309 = dma.hbm_to_vmem [thread:$0]  (!%p2923_p11), %s3265_s3, 176, %s206_s13, [#allocation10]  }
  0x37   : > { %s29_s29 = sadd.s32 1, %s2828_s19  ;;  %s216_s30 = sand.u32 1, %s2832_s20  }
  0x38   : > { %p30_p13 = scmp.ge.s32.totalorder %s29_s29, 3  ;;  %s218_s5 = sand.u32 1, %s2820_s17  }
  0x39   : > { %s2280_s6 = smul.u32 22528, %s2828_s19  ;;  %s217_s14 = scalar_lea.sflag [#allocation7], %s216_s30 }
  0x3a   : > { %s3288_s29 = smov (%p30_p13, %s29_s29), 0  ;;  %s2279_s27 = smul.u32 1408, %s218_s5 }
  0x3b   : > { %s229_s9 = scalar_lea.hbm %s3263_s1, %s2280_s6  ;;  %s57_s10 = ssub.s32 %s2828_s19, %s3288_s29 }
  0x3c   : > { %p60_p10 = scmp.eq.s32.totalorder %s57_s10, 0  ;;  %s220_s11 = scalar_lea.vmem [#allocation6], %s2279_s27 }
  0x3d   : > { %s230_s12 = sshll.u32 %s220_s11, 4  ;;  %p2716_p11 = pneg %p2927_p12  ;;  %s231_s12 = int_to_ptr.vmem [resolvable:$true] %s230_s12 }
  0x3e   : > { %s2971_s13 = scalar_select %p60_p10, %s2820_s17, %s62_s22  }
  0x3f   : > { %s2727_s15 = scalar_lea.vmem %s231_s12, 22528  ;;  %s2837_s25 = smov [#allocation6]  }
  0x40   : > { %p2728_p0 = scmp.ne.s32.totalorder %s231_s12, %s2727_s15  ;;  %s2732_s26 = sshll.u32 %s2837_s25, 4  ;;  %s2733_s26 = int_to_ptr.vmem [resolvable:$false] %s2732_s26 }
  0x41   : > { %s2734_s5 = scalar_lea.vmem %s2733_s26, 45056  ;;  %p2735_p3 = scmp.lt.s32.totalorder %s231_s12, %s2733_s26 }
  0x42   : > { %p2730_p1 = pnand %p2728_p0, %p2716_p11  ;;  %p2736_p2 = scmp.lt.s32.totalorder %s2734_s5, %s2727_s15 }
  0x44   : > { %p2731_p5 = pneg %p2730_p1  ;;  %p2737_p7 = por %p2736_p2, %p2735_p3 }
  0x46   : > { %p2738_p6 = pnand %p2737_p7, %p2731_p5 }
  0x48   : > { %2741 = shalt.err (!%p2738_p6)
}
  0x49   : > { %s2838_s6 = smov 704   ;;  %s2839_s22 = smov 44  }
  0x4a   : > { %2313 = dma.hbm_to_vmem [thread:$0]  (!%p2927_p12), %s229_s9, 22528, %s231_s12, %s217_s14, %s2838_s6, %s2838_s6, %s2839_s22  }
  0x4b   : > { %p3274_p8 = scmp.ne.s32.totalorder %s3271_s24, 0 }
  0x4c   : > { %p3275_p9 = scmp.eq.s32.totalorder (!%p3274_p8), %s2898_s21, 0 }
  0x4d   : > { %242 = sbr.rel (%p3274_p8) target bundleno = 541 (0x21d), region = 36 }
  0x52   : > { %2791 = dma.done.wait (%p3275_p9), [#allocation4], 96   ;;  %p3276_p4 = pmov %p3275_p9 }
  0x53   : > { %s248_s30 = sand.u32 1, %s2898_s21   ;;  %s250_s27 = sand.u32 1, %s2816_s16  }
  0x54   : > { %2793 = vsyncadd (%p3276_p4), [#allocation4], 4294967200  ;;  %s2281_s7 = smul.u32 1408, %s250_s27  ;;  %s249_s8 = scalar_lea.sflag [#allocation7], %s248_s30 }
  0x55   : > { %p3277_p13 = scmp.ne.s32.totalorder %s3270_s23, 0 }
  0x56   : > { %s2985_s10 = scalar_lea.vmem [#allocation6], %s2281_s7 }
  0x57   : > { %2795 = dma.done.wait (%p3277_p13), %s249_s8, 22528  }
  0x58   : > { %2797 = vsyncadd (%p3277_p13), %s249_s8, 4294944768  ;;  %p3278_p12 = pmov %p3276_p4 }
  0x59   : > { %p3279_p10 = pmov %p3276_p4 }
  0x5a   : > { %2799 = dma.done.wait (%p3278_p12), [#allocation7], 176  }
  0x5b   : > { %2801 = vsyncadd (%p3279_p10), [#allocation7], 4294967120  ;;  %p3280_p11 = pmov %p3276_p4 }
  0x5c   : > { %p3281_p0 = pmov %p3276_p4 }
  0x5d   : > { %2803 = dma.done.wait (%p3280_p11), [#allocation10], 176  }
  0x5e   : > { %2805 = vsyncadd (%p3281_p0), [#allocation10], 4294967120  ;;  %p2073_p1 = scmp.ne.s32.totalorder %s2824_s18, 0 }
  0x60   : > { %289 = sbr.rel (%p2073_p1) target bundleno = 104 (0x68), region = 56 }
  0x65   : > { %v2840_v0 = vmov 0.0  }
  0x66   : > { %290 = vst [vmem:[#allocation2] sm:$0xff] %v2840_v0  ;;  %291 = vst [vmem:[#allocation2 + $0x8] sm:$0xff] %v2840_v0 }
  0x67   : > { %292 = vst [vmem:[#allocation2 + $0x10] sm:$0x3f] %v2840_v0 }
  0x68 PF: > { %v2380_v1 = vld [vmem:[%s2985_s10 + $0x26c] ss:$44 sps:$4 sm:$0xff]   ;;  %v2382_v2 = vld [vmem:[%s2985_s10 + $0x274] ss:$44 sps:$4 sm:$0xff]   ;;  %v2385_v4 = vld [vmem:[%s2985_s10 + $0x270] ss:$44 sps:$4 sm:$0xff]   ;;  %v505_v41 = vlaneseq }
  0x69   : > { %1414 = vmatprep.subr.bf16.mxu0 %v2380_v1  ;;  %v2384_v3 = vld [vmem:[%s2985_s10 + $0x268] ss:$44 sps:$4 sm:$0xff]   ;;  %1455 = vmatprep.subr.bf16.mxu1 %v2382_v2  ;;  %v2390_v7 = vld [vmem:[%s2985_s10 + $0x210] ss:$44 sps:$4 sm:$0xff]   ;;  %v2391_v8 = vld [vmem:[%s2985_s10 + $0x218] ss:$44 sps:$4 sm:$0xff]  }
  0x6a   : > { %v2386_v5 = vld [vmem:[%s2985_s10 + $0x214] ss:$44 sps:$4 sm:$0xff]   ;;  %1415 = vmatpush1.bf16.msra.mxu0 %v2384_v3  ;;  %1456 = vmatpush1.bf16.msra.mxu1 %v2385_v4  ;;  %v2388_v6 = vld [vmem:[%s2985_s10 + $0x21c] ss:$44 sps:$4 sm:$0xff]   ;;  %v2394_v10 = vld [vmem:[%s2985_s10 + $0x1c4] ss:$44 sps:$4 sm:$0xff]  }
  0x6b   : > { %1416 = vmatprep.subr.bf16.mxu0 %v2386_v5  ;;  %1457 = vmatprep.subr.bf16.mxu1 %v2388_v6  ;;  %v2392_v9 = vld [vmem:[%s2985_s10 + $0x1bc] ss:$44 sps:$4 sm:$0xff]   ;;  %v2396_v11 = vld [vmem:[%s2985_s10 + $0x1b8] ss:$44 sps:$4 sm:$0xff]   ;;  %v2397_v12 = vld [vmem:[%s2985_s10 + $0x1c0] ss:$44 sps:$4 sm:$0xff]  }
  0x6c   : > { %v2398_v13 = vld [vmem:[%s2985_s10 + $0x164] ss:$44 sps:$4 sm:$0xff]   ;;  %v2400_v14 = vld [vmem:[%s2985_s10 + $0x16c] ss:$44 sps:$4 sm:$0xff]   ;;  %v2403_v16 = vld [vmem:[%s2985_s10 + $0x168] ss:$44 sps:$4 sm:$0xff]  }
  0x6d   : > { %v2402_v15 = vld [vmem:[%s2985_s10 + $0x160] ss:$44 sps:$4 sm:$0xff]   ;;  %v2408_v19 = vld [vmem:[%s2985_s10 + $0x108] ss:$44 sps:$4 sm:$0xff]   ;;  %v2409_v20 = vld [vmem:[%s2985_s10 + $0x110] ss:$44 sps:$4 sm:$0xff]  }
  0x6e   : > { %1417 = vmatpush1.bf16.msra.mxu0 %v2390_v7  ;;  %1458 = vmatpush1.bf16.msra.mxu1 %v2391_v8  ;;  %v2404_v17 = vld [vmem:[%s2985_s10 + $0x10c] ss:$44 sps:$4 sm:$0xff]   ;;  %v2406_v18 = vld [vmem:[%s2985_s10 + $0x114] ss:$44 sps:$4 sm:$0xff]   ;;  %v2412_v22 = vld [vmem:[%s2985_s10 + $0xbc] ss:$44 sps:$4 sm:$0xff]  }
  0x6f   : > { %1418 = vmatprep.subr.bf16.mxu0 %v2392_v9  ;;  %1459 = vmatprep.subr.bf16.mxu1 %v2394_v10  ;;  %v2410_v21 = vld [vmem:[%s2985_s10 + $0xb4] ss:$44 sps:$4 sm:$0xff]   ;;  %v2414_v23 = vld [vmem:[%s2985_s10 + $0xb0] ss:$44 sps:$4 sm:$0xff]   ;;  %v2415_v24 = vld [vmem:[%s2985_s10 + $0xb8] ss:$44 sps:$4 sm:$0xff]  }
  0x70   : > { %v2416_v25 = vld [vmem:[%s2985_s10 + $0x5c] ss:$44 sps:$4 sm:$0xff]   ;;  %v2418_v26 = vld [vmem:[%s2985_s10 + $0x64] ss:$44 sps:$4 sm:$0xff]   ;;  %v2421_v28 = vld [vmem:[%s2985_s10 + $0x60] ss:$44 sps:$4 sm:$0xff]  }
  0x71   : > { %v2420_v27 = vld [vmem:[%s2985_s10 + $0x58] ss:$44 sps:$4 sm:$0xff]   ;;  %v2426_v31 = vld [vmem:[%s2985_s10] ss:$44 sps:$4 sm:$0xff]   ;;  %v2427_v32 = vld [vmem:[%s2985_s10 + $0x8] ss:$44 sps:$4 sm:$0xff]  }
  0x72   : > { %1419 = vmatpush1.bf16.msra.mxu0 %v2396_v11  ;;  %1460 = vmatpush1.bf16.msra.mxu1 %v2397_v12  ;;  %v2422_v29 = vld [vmem:[%s2985_s10 + $0x4] ss:$44 sps:$4 sm:$0xff]   ;;  %v2424_v30 = vld [vmem:[%s2985_s10 + $0xc] ss:$44 sps:$4 sm:$0xff]   ;;  %v2430_v34 = vld [vmem:[%s2985_s10 + $0x534] ss:$44 sps:$4 sm:$0xff]  }
  0x73   : > { %1420 = vmatprep.subr.bf16.mxu0 %v2398_v13  ;;  %1461 = vmatprep.subr.bf16.mxu1 %v2400_v14  ;;  %v2428_v33 = vld [vmem:[%s2985_s10 + $0x52c] ss:$44 sps:$4 sm:$0xff]   ;;  %v2432_v35 = vld [vmem:[%s2985_s10 + $0x528] ss:$44 sps:$4 sm:$0xff]   ;;  %v2433_v36 = vld [vmem:[%s2985_s10 + $0x530] ss:$44 sps:$4 sm:$0xff]  }
  0x74   : > { %v2434_v37 = vld [vmem:[%s2985_s10 + $0x4d4] ss:$44 sps:$4 sm:$0xff]   ;;  %v2436_v38 = vld [vmem:[%s2985_s10 + $0x4dc] ss:$44 sps:$4 sm:$0xff]   ;;  %s2074_s23 = sshll.u32 %s2824_s18, 8  ;;  %v3043_v47 = vshrl.u32 %v505_v41, 7 }
  0x75   : > { %v2841_v39 = vmov 1966171168   ;;  %v2438_v42 = vld [vmem:[%s2985_s10 + $0x4d0] ss:$44 sps:$4 sm:$0xff]   ;;  %v2439_v43 = vld [vmem:[%s2985_s10 + $0x4d8] ss:$44 sps:$4 sm:$0xff]  }
  0x76   : > { %1421 = vmatpush1.bf16.msra.mxu0 %v2402_v15  ;;  %1462 = vmatpush1.bf16.msra.mxu1 %v2403_v16  ;;  %v503_v40 = vunpack.c.l.s4 %v2841_v39  ;;  %v2440_v44 = vld [vmem:[%s2985_s10 + $0x47c] ss:$44 sps:$4 sm:$0xff]   ;;  %v2442_v45 = vld [vmem:[%s2985_s10 + $0x484] ss:$44 sps:$4 sm:$0xff]   ;;  %s294_s24 = sshra.s32 %s2074_s23, 7  ;;  %p2252_p5 = scmp.ne.s32.totalorder %s2824_s18, 2 }
  0x77   : > { %1422 = vmatprep.subr.bf16.mxu0 %v2404_v17  ;;  %1463 = vmatprep.subr.bf16.mxu1 %v2406_v18  ;;  %v2444_v48 = vld [vmem:[%s2985_s10 + $0x478] ss:$44 sps:$4 sm:$0xff]   ;;  %v2445_v49 = vld [vmem:[%s2985_s10 + $0x480] ss:$44 sps:$4 sm:$0xff]   ;;  %s296_s28 = scalar_lea.vmem [#allocation3], %s294_s24 }
  0x78   : > { %v504_v46 = vunpack.c.0.s8 %v503_v40  ;;  %v2446_v50 = vld [vmem:[%s2985_s10 + $0x424] ss:$44 sps:$4 sm:$0xff]   ;;  %v2448_v51 = vld [vmem:[%s2985_s10 + $0x42c] ss:$44 sps:$4 sm:$0xff]   ;;  %v2451_v55 = vld [vmem:[%s2985_s10 + $0x428] ss:$44 sps:$4 sm:$0xff]  }
  0x79   : > { %v2075_v53 = vld.sshfl [vmem:[%s296_s28] sm:$0x11 pattern:$0x75316420]  ;;  %v2450_v54 = vld [vmem:[%s2985_s10 + $0x420] ss:$44 sps:$4 sm:$0xff]  }
  0x7a   : > { %1423 = vmatpush1.bf16.msra.mxu0 %v2408_v19  ;;  %1464 = vmatpush1.bf16.msra.mxu1 %v2409_v20  ;;  %v507_v52 = vsub.s32 %v504_v46, %v3043_v47  ;;  %v501_v56 = vcombine.high %v2075_v53, %v2075_v53  ;;  %v2452_v57 = vld [vmem:[%s2985_s10 + $0x3cc] ss:$44 sps:$4 sm:$0xff]   ;;  %v2454_v58 = vld [vmem:[%s2985_s10 + $0x3d4] ss:$44 sps:$4 sm:$0xff]   ;;  %v2457_v61 = vld [vmem:[%s2985_s10 + $0x3d0] ss:$44 sps:$4 sm:$0xff]  }
  0x7b   : > { %1424 = vmatprep.subr.bf16.mxu0 %v2410_v21  ;;  %1465 = vmatprep.subr.bf16.mxu1 %v2412_v22  ;;  %v2456_v60 = vld [vmem:[%s2985_s10 + $0x3c8] ss:$44 sps:$4 sm:$0xff]   ;;  %v2462_v0 = vld [vmem:[%s2985_s10 + $0x370] ss:$44 sps:$4 sm:$0xff]   ;;  %v2463_v1 = vld [vmem:[%s2985_s10 + $0x378] ss:$44 sps:$4 sm:$0xff]  }
  0x7c   : > { %v3054_v59 = vrot.slane %v501_v56, %v507_v52  ;;  %v2458_v62 = vld [vmem:[%s2985_s10 + $0x374] ss:$44 sps:$4 sm:$0xff]   ;;  %v2460_v63 = vld [vmem:[%s2985_s10 + $0x37c] ss:$44 sps:$4 sm:$0xff]   ;;  %v2466_v3 = vld [vmem:[%s2985_s10 + $0x324] ss:$44 sps:$4 sm:$0xff]   ;;  %v3074_v12 = vrot.slane %v2075_v53, %v507_v52 }
  0x7d   : > { %v2464_v2 = vld [vmem:[%s2985_s10 + $0x31c] ss:$44 sps:$4 sm:$0xff]   ;;  %v2468_v4 = vld [vmem:[%s2985_s10 + $0x318] ss:$44 sps:$4 sm:$0xff]   ;;  %v2469_v5 = vld [vmem:[%s2985_s10 + $0x320] ss:$44 sps:$4 sm:$0xff]  }
  0x7e   : > { %1425 = vmatpush1.bf16.msra.mxu0 %v2414_v23  ;;  %1466 = vmatpush1.bf16.msra.mxu1 %v2415_v24  ;;  %v2470_v6 = vld [vmem:[%s2985_s10 + $0x2c4] ss:$44 sps:$4 sm:$0xff]   ;;  %v2472_v7 = vld [vmem:[%s2985_s10 + $0x2cc] ss:$44 sps:$4 sm:$0xff]   ;;  %v2475_v9 = vld [vmem:[%s2985_s10 + $0x2c8] ss:$44 sps:$4 sm:$0xff]  }
  0x7f   : > { %1426 = vmatprep.subr.bf16.mxu0 %v2416_v25  ;;  %1467 = vmatprep.subr.bf16.mxu1 %v2418_v26  ;;  %v2474_v8 = vld [vmem:[%s2985_s10 + $0x2c0] ss:$44 sps:$4 sm:$0xff]   ;;  %v2478_v10 = vld [vmem:[%s2985_s10 + $0x27c] ss:$44 sps:$4 sm:$0xff]   ;;  %v2481_v11 = vld [vmem:[%s2985_s10 + $0x284] ss:$44 sps:$4 sm:$0xff]  }
  0x80   : > { %1446 = vmatprep.mubr.bf16.mxu0 %v3054_v59  ;;  %1487 = vmatprep.mubr.bf16.mxu1 %v3054_v59  ;;  %v2476_v13 = vld [vmem:[%s2985_s10 + $0x278] ss:$44 sps:$4 sm:$0xff]   ;;  %v2479_v14 = vld [vmem:[%s2985_s10 + $0x280] ss:$44 sps:$4 sm:$0xff]   ;;  %v2485_v18 = vld [vmem:[%s2985_s10 + $0x228] ss:$44 sps:$4 sm:$0xff]  }
  0x81   : > { %v2484_v15 = vld [vmem:[%s2985_s10 + $0x224] ss:$44 sps:$4 sm:$0xff]   ;;  %v2487_v16 = vld [vmem:[%s2985_s10 + $0x22c] ss:$44 sps:$4 sm:$0xff]   ;;  %v2493_v20 = vld [vmem:[%s2985_s10 + $0x1d4] ss:$44 sps:$4 sm:$0xff]  }
  0x82   : > { %1427 = vmatpush1.bf16.msra.mxu0 %v2420_v27  ;;  %1468 = vmatpush1.bf16.msra.mxu1 %v2421_v28  ;;  %v2482_v17 = vld [vmem:[%s2985_s10 + $0x220] ss:$44 sps:$4 sm:$0xff]   ;;  %v2488_v21 = vld [vmem:[%s2985_s10 + $0x1c8] ss:$44 sps:$4 sm:$0xff]   ;;  %v2491_v22 = vld [vmem:[%s2985_s10 + $0x1d0] ss:$44 sps:$4 sm:$0xff]  }
  0x83   : > { %1428 = vmatprep.subr.bf16.mxu0 %v2422_v29  ;;  %1469 = vmatprep.subr.bf16.mxu1 %v2424_v30  ;;  %v2490_v19 = vld [vmem:[%s2985_s10 + $0x1cc] ss:$44 sps:$4 sm:$0xff]   ;;  %v2496_v23 = vld [vmem:[%s2985_s10 + $0x174] ss:$44 sps:$4 sm:$0xff]   ;;  %v2499_v24 = vld [vmem:[%s2985_s10 + $0x17c] ss:$44 sps:$4 sm:$0xff]  }
  0x84   : > { %v2494_v25 = vld [vmem:[%s2985_s10 + $0x170] ss:$44 sps:$4 sm:$0xff]   ;;  %v2497_v26 = vld [vmem:[%s2985_s10 + $0x178] ss:$44 sps:$4 sm:$0xff]   ;;  %v2503_v30 = vld [vmem:[%s2985_s10 + $0x120] ss:$44 sps:$4 sm:$0xff]  }
  0x85   : > { %v2502_v27 = vld [vmem:[%s2985_s10 + $0x11c] ss:$44 sps:$4 sm:$0xff]   ;;  %v2505_v28 = vld [vmem:[%s2985_s10 + $0x124] ss:$44 sps:$4 sm:$0xff]   ;;  %v2520_v39 = vld [vmem:[%s2985_s10 + $0x14] ss:$44 sps:$4 sm:$0xff]  }
  0x86   : > { %1429 = vmatpush1.bf16.msra.mxu0 %v2426_v31  ;;  %1470 = vmatpush1.bf16.msra.mxu1 %v2427_v32  ;;  %v2500_v29 = vld [vmem:[%s2985_s10 + $0x118] ss:$44 sps:$4 sm:$0xff]   ;;  %v2523_v40 = vld [vmem:[%s2985_s10 + $0x1c] ss:$44 sps:$4 sm:$0xff]   ;;  %v2527_v46 = vld [vmem:[%s2985_s10 + $0x540] ss:$44 sps:$4 sm:$0xff]  }
  0x87   : > { %1430 = vmatprep.subr.bf16.mxu0 %v2428_v33  ;;  %1471 = vmatprep.subr.bf16.mxu1 %v2430_v34  ;;  %v2508_v31 = vld [vmem:[%s2985_s10 + $0xc4] ss:$44 sps:$4 sm:$0xff]   ;;  %v2511_v32 = vld [vmem:[%s2985_s10 + $0xcc] ss:$44 sps:$4 sm:$0xff]   ;;  %v2509_v34 = vld [vmem:[%s2985_s10 + $0xc8] ss:$44 sps:$4 sm:$0xff]  }
  0x88   : > { %v2506_v33 = vld [vmem:[%s2985_s10 + $0xc0] ss:$44 sps:$4 sm:$0xff]   ;;  %v2518_v41 = vld [vmem:[%s2985_s10 + $0x10] ss:$44 sps:$4 sm:$0xff]  }
  0x89   : > { %v2538_v52 = vld [vmem:[%s2985_s10 + $0x48c] ss:$44 sps:$4 sm:$0xff]   ;;  %v2541_v53 = vld [vmem:[%s2985_s10 + $0x494] ss:$44 sps:$4 sm:$0xff]  }
  0x8a   : > { %1431 = vmatpush2.bf16.msra.mxu0 %v2432_v35  ;;  %1472 = vmatpush2.bf16.msra.mxu1 %v2433_v36  ;;  %v2514_v35 = vld [vmem:[%s2985_s10 + $0x6c] ss:$44 sps:$4 sm:$0xff]   ;;  %v2517_v36 = vld [vmem:[%s2985_s10 + $0x74] ss:$44 sps:$4 sm:$0xff]  }
  0x8b   : > { %1432 = vmatprep.subr.bf16.mxu0 %v2434_v37  ;;  %1473 = vmatprep.subr.bf16.mxu1 %v2436_v38  ;;  %v2512_v37 = vld [vmem:[%s2985_s10 + $0x68] ss:$44 sps:$4 sm:$0xff]   ;;  %v2515_v38 = vld [vmem:[%s2985_s10 + $0x70] ss:$44 sps:$4 sm:$0xff]  }
  0x8c   : > { %v2544_v56 = vld [vmem:[%s2985_s10 + $0x434] ss:$44 sps:$4 sm:$0xff]  }
  0x8e   : > { %1433 = vmatpush2.bf16.msra.mxu0 %v2438_v42  ;;  %1474 = vmatpush2.bf16.msra.mxu1 %v2439_v43  ;;  %v2521_v42 = vld [vmem:[%s2985_s10 + $0x18] ss:$44 sps:$4 sm:$0xff]   ;;  %v2526_v43 = vld [vmem:[%s2985_s10 + $0x53c] ss:$44 sps:$4 sm:$0xff]  }
  0x8f   : > { %1434 = vmatprep.subr.bf16.mxu0 %v2440_v44  ;;  %1475 = vmatprep.subr.bf16.mxu1 %v2442_v45  ;;  %v2529_v44 = vld [vmem:[%s2985_s10 + $0x544] ss:$44 sps:$4 sm:$0xff]  }
  0x90   : > { %v2524_v45 = vld [vmem:[%s2985_s10 + $0x538] ss:$44 sps:$4 sm:$0xff]  }
  0x92   : > { %1435 = vmatpush2.bf16.msra.mxu0 %v2444_v48  ;;  %1476 = vmatpush2.bf16.msra.mxu1 %v2445_v49  ;;  %v2532_v48 = vld [vmem:[%s2985_s10 + $0x4e4] ss:$44 sps:$4 sm:$0xff]   ;;  %v2535_v49 = vld [vmem:[%s2985_s10 + $0x4ec] ss:$44 sps:$4 sm:$0xff]  }
  0x93   : > { %1436 = vmatprep.subr.bf16.mxu0 %v2446_v50  ;;  %1477 = vmatprep.subr.bf16.mxu1 %v2448_v51  ;;  %v2530_v50 = vld [vmem:[%s2985_s10 + $0x4e0] ss:$44 sps:$4 sm:$0xff]   ;;  %v2533_v51 = vld [vmem:[%s2985_s10 + $0x4e8] ss:$44 sps:$4 sm:$0xff]  }
  0x96   : > { %1437 = vmatpush2.bf16.msra.mxu0 %v2450_v54  ;;  %1478 = vmatpush2.bf16.msra.mxu1 %v2451_v55  ;;  %v2536_v54 = vld [vmem:[%s2985_s10 + $0x488] ss:$44 sps:$4 sm:$0xff]   ;;  %v2539_v55 = vld [vmem:[%s2985_s10 + $0x490] ss:$44 sps:$4 sm:$0xff]  }
  0x97   : > { %1438 = vmatprep.subr.bf16.mxu0 %v2452_v57  ;;  %1479 = vmatprep.subr.bf16.mxu1 %v2454_v58  ;;  %v2547_v57 = vld [vmem:[%s2985_s10 + $0x43c] ss:$44 sps:$4 sm:$0xff]  }
  0x98   : > { %v2542_v58 = vld [vmem:[%s2985_s10 + $0x430] ss:$44 sps:$4 sm:$0xff]  }
  0x9a   : > { %1439 = vmatpush2.bf16.msra.mxu0 %v2456_v60  ;;  %1480 = vmatpush2.bf16.msra.mxu1 %v2457_v61  ;;  %v2545_v60 = vld [vmem:[%s2985_s10 + $0x438] ss:$44 sps:$4 sm:$0xff]   ;;  %v2550_v61 = vld [vmem:[%s2985_s10 + $0x3dc] ss:$44 sps:$4 sm:$0xff]  }
  0x9b   : > { %1440 = vmatprep.subr.bf16.mxu0 %v2458_v62  ;;  %1481 = vmatprep.subr.bf16.mxu1 %v2460_v63  ;;  %v2553_v62 = vld [vmem:[%s2985_s10 + $0x3e4] ss:$44 sps:$4 sm:$0xff]  }
  0x9c   : > { %v2548_v63 = vld [vmem:[%s2985_s10 + $0x3d8] ss:$44 sps:$4 sm:$0xff]  }
  0x9e   : > { %1441 = vmatpush2.bf16.msra.mxu0 %v2462_v0  ;;  %1482 = vmatpush2.bf16.msra.mxu1 %v2463_v1  ;;  %v2551_v0 = vld [vmem:[%s2985_s10 + $0x3e0] ss:$44 sps:$4 sm:$0xff]   ;;  %v2556_v1 = vld [vmem:[%s2985_s10 + $0x384] ss:$44 sps:$4 sm:$0xff]  }
  0x9f   : > { %1442 = vmatprep.subr.bf16.mxu0 %v2464_v2  ;;  %1483 = vmatprep.subr.bf16.mxu1 %v2466_v3  ;;  %v2559_v2 = vld [vmem:[%s2985_s10 + $0x38c] ss:$44 sps:$4 sm:$0xff]  }
  0xa0   : > { %v2554_v3 = vld [vmem:[%s2985_s10 + $0x380] ss:$44 sps:$4 sm:$0xff]  }
  0xa2   : > { %1443 = vmatpush2.bf16.msra.mxu0 %v2468_v4  ;;  %1484 = vmatpush2.bf16.msra.mxu1 %v2469_v5  ;;  %v2557_v4 = vld [vmem:[%s2985_s10 + $0x388] ss:$44 sps:$4 sm:$0xff]   ;;  %v2562_v5 = vld [vmem:[%s2985_s10 + $0x32c] ss:$44 sps:$4 sm:$0xff]  }
  0xa3   : > { %1444 = vmatprep.subr.bf16.mxu0 %v2470_v6  ;;  %1485 = vmatprep.subr.bf16.mxu1 %v2472_v7  ;;  %v2565_v6 = vld [vmem:[%s2985_s10 + $0x334] ss:$44 sps:$4 sm:$0xff]  }
  0xa4   : > { %v2560_v7 = vld [vmem:[%s2985_s10 + $0x328] ss:$44 sps:$4 sm:$0xff]  }
  0xa6   : > { %1445 = vmatpush2.bf16.msra.mxu0 %v2474_v8  ;;  %1486 = vmatpush2.bf16.msra.mxu1 %v2475_v9  ;;  %v2563_v8 = vld [vmem:[%s2985_s10 + $0x330] ss:$44 sps:$4 sm:$0xff]   ;;  %v2568_v9 = vld [vmem:[%s2985_s10 + $0x2d4] ss:$44 sps:$4 sm:$0xff]  }
  0xa7   : > { %1496 = vmatprep.subr.bf16.mxu0 %v2478_v10  ;;  %1537 = vmatprep.subr.bf16.mxu1 %v2481_v11  ;;  %v2571_v10 = vld [vmem:[%s2985_s10 + $0x2dc] ss:$44 sps:$4 sm:$0xff]  }
  0xa8   : > { %v2566_v11 = vld [vmem:[%s2985_s10 + $0x2d0] ss:$44 sps:$4 sm:$0xff]  }
  0xa9   : > { %1447 = vmatmul.mubr.bf16.vlgmr.msra.gmra.mxu0 %v3074_v12  ;;  %1488 = vmatmul.mubr.bf16.vlgmr.msra.gmra.mxu1 %v3074_v12 }
  0xaa   : > { %1497 = vmatpush1.bf16.msra.mxu0 %v2476_v13  ;;  %1538 = vmatpush1.bf16.msra.mxu1 %v2479_v14  ;;  %v2569_v13 = vld [vmem:[%s2985_s10 + $0x2d8] ss:$44 sps:$4 sm:$0xff]  }
  0xab   : > { %1498 = vmatprep.subr.bf16.mxu0 %v2484_v15  ;;  %1539 = vmatprep.subr.bf16.mxu1 %v2487_v16  ;;  %v2574_v14 = vld [vmem:[%s2985_s10 + $0x28c] ss:$44 sps:$4 sm:$0xff]   ;;  %v2593_v15 = vld [vmem:[%s2985_s10 + $0x550] ss:$44 sps:$4 sm:$0xff]   ;;  %v2572_v16 = vld [vmem:[%s2985_s10 + $0x288] ss:$44 sps:$4 sm:$0xff]  }
  0xac   : > { %1528 = vmatprep.mubr.bf16.mxu0 %v3054_v59  ;;  %1569 = vmatprep.mubr.bf16.mxu1 %v3054_v59 }
  0xae   : > { %1499 = vmatpush1.bf16.msra.mxu0 %v2482_v17  ;;  %1540 = vmatpush1.bf16.msra.mxu1 %v2485_v18  ;;  %v2594_v17 = vld [vmem:[%s2985_s10 + $0x290] ss:$44 sps:$4 sm:$0xff]   ;;  %v2577_v18 = vld [vmem:[%s2985_s10 + $0x234] ss:$44 sps:$4 sm:$0xff]  }
  0xaf   : > { %1500 = vmatprep.subr.bf16.mxu0 %v2490_v19  ;;  %1541 = vmatprep.subr.bf16.mxu1 %v2493_v20  ;;  %v2598_v19 = vld [vmem:[%s2985_s10 + $0x4f8] ss:$44 sps:$4 sm:$0xff]   ;;  %v2575_v20 = vld [vmem:[%s2985_s10 + $0x230] ss:$44 sps:$4 sm:$0xff]  }
  0xb2   : > { %1501 = vmatpush1.bf16.msra.mxu0 %v2488_v21  ;;  %1542 = vmatpush1.bf16.msra.mxu1 %v2491_v22  ;;  %v2599_v21 = vld [vmem:[%s2985_s10 + $0x238] ss:$44 sps:$4 sm:$0xff]   ;;  %v2580_v22 = vld [vmem:[%s2985_s10 + $0x1dc] ss:$44 sps:$4 sm:$0xff]  }
  0xb3   : > { %1502 = vmatprep.subr.bf16.mxu0 %v2496_v23  ;;  %1543 = vmatprep.subr.bf16.mxu1 %v2499_v24  ;;  %v2603_v23 = vld [vmem:[%s2985_s10 + $0x4a0] ss:$44 sps:$4 sm:$0xff]   ;;  %v2578_v24 = vld [vmem:[%s2985_s10 + $0x1d8] ss:$44 sps:$4 sm:$0xff]  }
  0xb6   : > { %1503 = vmatpush1.bf16.msra.mxu0 %v2494_v25  ;;  %1544 = vmatpush1.bf16.msra.mxu1 %v2497_v26  ;;  %v2604_v25 = vld [vmem:[%s2985_s10 + $0x1e0] ss:$44 sps:$4 sm:$0xff]   ;;  %v2583_v26 = vld [vmem:[%s2985_s10 + $0x184] ss:$44 sps:$4 sm:$0xff]  }
  0xb7   : > { %1504 = vmatprep.subr.bf16.mxu0 %v2502_v27  ;;  %1545 = vmatprep.subr.bf16.mxu1 %v2505_v28  ;;  %v2608_v27 = vld [vmem:[%s2985_s10 + $0x448] ss:$44 sps:$4 sm:$0xff]   ;;  %v2581_v28 = vld [vmem:[%s2985_s10 + $0x180] ss:$44 sps:$4 sm:$0xff]  }
  0xba   : > { %1505 = vmatpush1.bf16.msra.mxu0 %v2500_v29  ;;  %1546 = vmatpush1.bf16.msra.mxu1 %v2503_v30  ;;  %v2609_v29 = vld [vmem:[%s2985_s10 + $0x188] ss:$44 sps:$4 sm:$0xff]   ;;  %v2613_v30 = vld [vmem:[%s2985_s10 + $0x3f0] ss:$44 sps:$4 sm:$0xff]  }
  0xbb   : > { %1506 = vmatprep.subr.bf16.mxu0 %v2508_v31  ;;  %1547 = vmatprep.subr.bf16.mxu1 %v2511_v32  ;;  %v2584_v31 = vld [vmem:[%s2985_s10 + $0x128] ss:$44 sps:$4 sm:$0xff]   ;;  %v2614_v32 = vld [vmem:[%s2985_s10 + $0x130] ss:$44 sps:$4 sm:$0xff]  }
  0xbe   : > { %1507 = vmatpush1.bf16.msra.mxu0 %v2506_v33  ;;  %1548 = vmatpush1.bf16.msra.mxu1 %v2509_v34  ;;  %v2589_v33 = vld [vmem:[%s2985_s10 + $0xd4] ss:$44 sps:$4 sm:$0xff]   ;;  %v2618_v34 = vld [vmem:[%s2985_s10 + $0x398] ss:$44 sps:$4 sm:$0xff]  }
  0xbf   : > { %1508 = vmatprep.subr.bf16.mxu0 %v2514_v35  ;;  %1549 = vmatprep.subr.bf16.mxu1 %v2517_v36  ;;  %v2587_v35 = vld [vmem:[%s2985_s10 + $0xd0] ss:$44 sps:$4 sm:$0xff]   ;;  %v2619_v36 = vld [vmem:[%s2985_s10 + $0xd8] ss:$44 sps:$4 sm:$0xff]  }
  0xc2   : > { %1509 = vmatpush1.bf16.msra.mxu0 %v2512_v37  ;;  %1550 = vmatpush1.bf16.msra.mxu1 %v2515_v38  ;;  %v2592_v37 = vld [vmem:[%s2985_s10 + $0x7c] ss:$44 sps:$4 sm:$0xff]   ;;  %v2623_v38 = vld [vmem:[%s2985_s10 + $0x340] ss:$44 sps:$4 sm:$0xff]  }
  0xc3   : > { %1510 = vmatprep.subr.bf16.mxu0 %v2520_v39  ;;  %1551 = vmatprep.subr.bf16.mxu1 %v2523_v40  ;;  %v2590_v39 = vld [vmem:[%s2985_s10 + $0x78] ss:$44 sps:$4 sm:$0xff]   ;;  %v2624_v40 = vld [vmem:[%s2985_s10 + $0x80] ss:$44 sps:$4 sm:$0xff]  }
  0xc6   : > { %1511 = vmatpush1.bf16.msra.mxu0 %v2518_v41  ;;  %1552 = vmatpush1.bf16.msra.mxu1 %v2521_v42  ;;  %v2597_v41 = vld [vmem:[%s2985_s10 + $0x24] ss:$44 sps:$4 sm:$0xff]   ;;  %v2628_v42 = vld [vmem:[%s2985_s10 + $0x2e8] ss:$44 sps:$4 sm:$0xff]  }
  0xc7   : > { %1512 = vmatprep.subr.bf16.mxu0 %v2526_v43  ;;  %1553 = vmatprep.subr.bf16.mxu1 %v2529_v44  ;;  %v2595_v43 = vld [vmem:[%s2985_s10 + $0x20] ss:$44 sps:$4 sm:$0xff]   ;;  %v2629_v44 = vld [vmem:[%s2985_s10 + $0x28] ss:$44 sps:$4 sm:$0xff]  }
  0xca   : > { %1513 = vmatpush2.bf16.msra.mxu0 %v2524_v45  ;;  %1554 = vmatpush2.bf16.msra.mxu1 %v2527_v46  ;;  %v2602_v45 = vld [vmem:[%s2985_s10 + $0x54c] ss:$44 sps:$4 sm:$0xff]   ;;  %v2600_v46 = vld [vmem:[%s2985_s10 + $0x548] ss:$44 sps:$4 sm:$0xff]  }
  0xcb   : > { %1514 = vmatprep.subr.bf16.mxu0 %v2532_v48  ;;  %1555 = vmatprep.subr.bf16.mxu1 %v2535_v49  ;;  %v2607_v48 = vld [vmem:[%s2985_s10 + $0x4f4] ss:$44 sps:$4 sm:$0xff]   ;;  %v2605_v49 = vld [vmem:[%s2985_s10 + $0x4f0] ss:$44 sps:$4 sm:$0xff]  }
  0xce   : > { %1515 = vmatpush2.bf16.msra.mxu0 %v2530_v50  ;;  %1556 = vmatpush2.bf16.msra.mxu1 %v2533_v51  ;;  %v2612_v50 = vld [vmem:[%s2985_s10 + $0x49c] ss:$44 sps:$4 sm:$0xff]   ;;  %v2610_v51 = vld [vmem:[%s2985_s10 + $0x498] ss:$44 sps:$4 sm:$0xff]  }
  0xcf   : > { %1516 = vmatprep.subr.bf16.mxu0 %v2538_v52  ;;  %1557 = vmatprep.subr.bf16.mxu1 %v2541_v53  ;;  %v2617_v52 = vld [vmem:[%s2985_s10 + $0x444] ss:$44 sps:$4 sm:$0xff]   ;;  %v2615_v53 = vld [vmem:[%s2985_s10 + $0x440] ss:$44 sps:$4 sm:$0xff]  }
  0xd2   : > { %1517 = vmatpush2.bf16.msra.mxu0 %v2536_v54  ;;  %1558 = vmatpush2.bf16.msra.mxu1 %v2539_v55  ;;  %v2622_v54 = vld [vmem:[%s2985_s10 + $0x3ec] ss:$44 sps:$4 sm:$0xff]   ;;  %v2620_v55 = vld [vmem:[%s2985_s10 + $0x3e8] ss:$44 sps:$4 sm:$0xff]  }
  0xd3   : > { %1518 = vmatprep.subr.bf16.mxu0 %v2544_v56  ;;  %1559 = vmatprep.subr.bf16.mxu1 %v2547_v57  ;;  %v2627_v56 = vld [vmem:[%s2985_s10 + $0x394] ss:$44 sps:$4 sm:$0xff]   ;;  %v2625_v57 = vld [vmem:[%s2985_s10 + $0x390] ss:$44 sps:$4 sm:$0xff]  }
  0xd6   : > { %1519 = vmatpush2.bf16.msra.mxu0 %v2542_v58  ;;  %1560 = vmatpush2.bf16.msra.mxu1 %v2545_v60  ;;  %v2632_v58 = vld [vmem:[%s2985_s10 + $0x33c] ss:$44 sps:$4 sm:$0xff]   ;;  %v2630_v60 = vld [vmem:[%s2985_s10 + $0x338] ss:$44 sps:$4 sm:$0xff]  }
  0xd7   : > { %1520 = vmatprep.subr.bf16.mxu0 %v2550_v61  ;;  %1561 = vmatprep.subr.bf16.mxu1 %v2553_v62  ;;  %v2635_v61 = vld [vmem:[%s2985_s10 + $0x2e4] ss:$44 sps:$4 sm:$0xff]   ;;  %v2633_v62 = vld [vmem:[%s2985_s10 + $0x2e0] ss:$44 sps:$4 sm:$0xff]  }
  0xda   : > { %1521 = vmatpush2.bf16.msra.mxu0 %v2548_v63  ;;  %1562 = vmatpush2.bf16.msra.mxu1 %v2551_v0  ;;  %v2842_v63 = vmov 1983009808  }
  0xdb   : > { %1522 = vmatprep.subr.bf16.mxu0 %v2556_v1  ;;  %1563 = vmatprep.subr.bf16.mxu1 %v2559_v2  ;;  %v1673_v0 = vunpack.c.l.s4 %v2842_v63 }
  0xdd   : > { %v1674_v1 = vunpack.c.0.s8 %v1673_v0 }
  0xde   : > { %1523 = vmatpush2.bf16.msra.mxu0 %v2554_v3  ;;  %1564 = vmatpush2.bf16.msra.mxu1 %v2557_v4 }
  0xdf   : > { %1524 = vmatprep.subr.bf16.mxu0 %v2562_v5  ;;  %1565 = vmatprep.subr.bf16.mxu1 %v2565_v6  ;;  %v3197_v4 = vsub.s32 %v1674_v1, %v3043_v47 }
  0xe2   : > { %1525 = vmatpush2.bf16.msra.mxu0 %v2560_v7  ;;  %1566 = vmatpush2.bf16.msra.mxu1 %v2563_v8 }
  0xe3   : > { %1526 = vmatprep.subr.bf16.mxu0 %v2568_v9  ;;  %1567 = vmatprep.subr.bf16.mxu1 %v2571_v10 }
  0xe6   : > { %1527 = vmatpush2.bf16.msra.mxu0 %v2566_v11  ;;  %1568 = vmatpush2.bf16.msra.mxu1 %v2569_v13 }
  0xe7   : > { %1578 = vmatprep.subr.bf16.mxu0 %v2574_v14  ;;  %2257 = vmatprep.subr.bf16.mxu1 %v2593_v15  ;;  %v490_v14 = vld [vmem:[#allocation2] sm:$0xff] }
  0xe9   : > { %1529 = vmatmul.mubr.bf16.vlgmr.msra.gmra.mxu0 %v3074_v12  ;;  %1570 = vmatmul.mubr.bf16.vlgmr.msra.gmra.mxu1 %v3074_v12 }
  0xea   : > { %1579 = vmatpush1.bf16.msra.mxu0 %v2572_v16  ;;  %2258 = vmatpush3.bf16.msra.mxu1 %v2594_v17 }
  0xeb   : > { %1580 = vmatprep.subr.bf16.mxu0 %v2577_v18  ;;  %2259 = vmatprep.subr.bf16.mxu1 %v2598_v19 }
  0xec   : > { %1651 = vmatprep.mubr.bf16.mxu1 %v3054_v59  ;;  %1610 = vmatprep.mubr.bf16.mxu0 %v3054_v59  ;;  %v2586_v59 = vld [vmem:[%s2985_s10 + $0x12c] ss:$44 sps:$4 sm:$0xff]  }
  0xee   : > { %1581 = vmatpush1.bf16.msra.mxu0 %v2575_v20  ;;  %2260 = vmatpush3.bf16.msra.mxu1 %v2599_v21 }
  0xef   : > { %1582 = vmatprep.subr.bf16.mxu0 %v2580_v22  ;;  %2261 = vmatprep.subr.bf16.mxu1 %v2603_v23 }
  0xf2   : > { %1583 = vmatpush1.bf16.msra.mxu0 %v2578_v24  ;;  %2262 = vmatpush3.bf16.msra.mxu1 %v2604_v25 }
  0xf3   : > { %1584 = vmatprep.subr.bf16.mxu0 %v2583_v26  ;;  %2263 = vmatprep.subr.bf16.mxu1 %v2608_v27 }
  0xf6   : > { %1585 = vmatpush1.bf16.msra.mxu0 %v2581_v28  ;;  %2264 = vmatpush3.bf16.msra.mxu1 %v2609_v29  ;;  %v491_v28 = vld [vmem:[#allocation2 + $0x8] sm:$0xff] }
  0xf7   : > { %1586 = vmatprep.subr.bf16.mxu0 %v2586_v59  ;;  %2265 = vmatprep.subr.bf16.mxu1 %v2613_v30 }
  0xfa   : > { %1587 = vmatpush1.bf16.msra.mxu0 %v2584_v31  ;;  %2266 = vmatpush3.bf16.msra.mxu1 %v2614_v32 }
  0xfb   : > { %1588 = vmatprep.subr.bf16.mxu0 %v2589_v33  ;;  %2267 = vmatprep.subr.bf16.mxu1 %v2618_v34 }
  0xfe   : > { %1589 = vmatpush1.bf16.msra.mxu0 %v2587_v35  ;;  %2268 = vmatpush3.bf16.msra.mxu1 %v2619_v36 }
  0xff   : > { %1590 = vmatprep.subr.bf16.mxu0 %v2592_v37  ;;  %2269 = vmatprep.subr.bf16.mxu1 %v2623_v38 }
 0x102   : > { %1591 = vmatpush1.bf16.msra.mxu0 %v2590_v39  ;;  %2270 = vmatpush3.bf16.msra.mxu1 %v2624_v40 }
 0x103   : > { %1592 = vmatprep.subr.bf16.mxu0 %v2597_v41  ;;  %2271 = vmatprep.subr.bf16.mxu1 %v2628_v42 }
 0x106   : > { %1593 = vmatpush1.bf16.msra.mxu0 %v2595_v43  ;;  %2272 = vmatpush3.bf16.msra.mxu1 %v2629_v44  ;;  %v492_v43 = vld [vmem:[#allocation2 + $0x10] sm:$0x3f] }
 0x107   : > { %1594 = vmatprep.subr.bf16.mxu0 %v2602_v45 }
 0x109   : > { %1652 = vmatmul.mubr.bf16.vlgmr.msra.gmra.mxu1 %v3074_v12 }
 0x10a   : > { %1595 = vmatpush2.bf16.msra.mxu0 %v2600_v46 }
 0x10b   : > { %1596 = vmatprep.subr.bf16.mxu0 %v2607_v48 }
 0x10e   : > { %1597 = vmatpush2.bf16.msra.mxu0 %v2605_v49 }
 0x10f   : > { %1598 = vmatprep.subr.bf16.mxu0 %v2612_v50 }
 0x112   : > { %1599 = vmatpush2.bf16.msra.mxu0 %v2610_v51 }
 0x113   : > { %1600 = vmatprep.subr.bf16.mxu0 %v2617_v52 }
 0x116   : > { %1601 = vmatpush2.bf16.msra.mxu0 %v2615_v53 }
 0x117   : > { %1602 = vmatprep.subr.bf16.mxu0 %v2622_v54 }
 0x11a   : > { %1603 = vmatpush2.bf16.msra.mxu0 %v2620_v55 }
 0x11b   : > { %1604 = vmatprep.subr.bf16.mxu0 %v2627_v56 }
 0x11e   : > { %1605 = vmatpush2.bf16.msra.mxu0 %v2625_v57 }
 0x11f   : > { %1606 = vmatprep.subr.bf16.mxu0 %v2632_v58 }
 0x122   : > { %1607 = vmatpush2.bf16.msra.mxu0 %v2630_v60 }
 0x123   : > { %1608 = vmatprep.subr.bf16.mxu0 %v2635_v61 }
 0x126   : > { %1609 = vmatpush2.bf16.msra.mxu0 %v2633_v62 }
 0x129   : > { %1611 = vmatmul.mubr.bf16.vlgmr.msra.gmra.mxu0 %v3074_v12 }
 0x169   : > { %v1448_v2 = vpop.f32.mrf.mxu0  ;;  %v1489_v3 = vpop.f32.mrf.mxu1 }
 0x16b   : > { %v1450_v5 = vpop.f32.mrf.mxu0  ;;  %v1491_v6 = vpop.f32.mrf.mxu1 }
 0x16c   : > { %v1670_v7 = vcombine.low %v1448_v2, %v1450_v5  ;;  %v1671_v8 = vcombine.low %v1489_v3, %v1491_v6 }
 0x16d   : > { %v1452_v9 = vpop.f32.mrf.mxu0  ;;  %v1493_v10 = vpop.f32.mrf.mxu1 }
 0x16e   : > { %v1678_v11 = vrot.slane %v1670_v7, %v3197_v4  ;;  %v1685_v13 = vrot.slane %v1671_v8, %v3197_v4 }
 0x16f   : > { %v1453_v12 = vpop.f32.mrf.mxu0  ;;  %v1494_v15 = vpop.f32.mrf.mxu1 }
 0x170   : > { %v1686_v16 = vcombine.low %v1678_v11, %v1685_v13 }
 0x172   : > { %v1723_v17 = vadd.f32 %v1686_v16, %v490_v14 }
 0x174   : > { %1726 = vst [vmem:[#allocation2] sm:$0xff] %v1723_v17 }
 0x1a9   : > { %v1530_v18 = vpop.f32.mrf.mxu0  ;;  %v1571_v19 = vpop.f32.mrf.mxu1 }
 0x1ab   : > { %v1532_v20 = vpop.f32.mrf.mxu0  ;;  %v1573_v21 = vpop.f32.mrf.mxu1 }
 0x1ac   : > { %v1687_v22 = vcombine.low %v1530_v18, %v1532_v20  ;;  %v1688_v23 = vcombine.low %v1571_v19, %v1573_v21 }
 0x1ad   : > { %v1534_v24 = vpop.f32.mrf.mxu0  ;;  %v1575_v25 = vpop.f32.mrf.mxu1 }
 0x1ae   : > { %v1695_v26 = vrot.slane %v1687_v22, %v3197_v4  ;;  %v1702_v27 = vrot.slane %v1688_v23, %v3197_v4 }
 0x1af   : > { %v1535_v29 = vpop.f32.mrf.mxu0  ;;  %v1576_v59 = vpop.f32.mrf.mxu1 }
 0x1b0   : > { %v1703_v30 = vcombine.low %v1695_v26, %v1702_v27 }
 0x1b2   : > { %v1724_v31 = vadd.f32 %v1703_v30, %v491_v28 }
 0x1b4   : > { %1727 = vst [vmem:[#allocation2 + $0x8] sm:$0xff] %v1724_v31 }
 0x1c9   : > { %v2273_v32 = vpop.f32.mrf.mxu1 }
 0x1cb   : > { %v2274_v33 = vpop.f32.mrf.mxu1 }
 0x1cc   : > { %v2275_v37 = vadd.f32 %v2274_v33, %v2273_v32 }
 0x1cd   : > { %v2276_v34 = vpop.f32.mrf.mxu1 }
 0x1ce   : > { %v1718_v41 = vrot.slane %v2275_v37, %v3197_v4 }
 0x1cf   : > { %v2277_v35 = vpop.f32.mrf.mxu1 }
 0x1e9   : > { %v1612_v36 = vpop.f32.mrf.mxu0 }
 0x1eb   : > { %v1614_v38 = vpop.f32.mrf.mxu0 }
 0x1ec   : > { %v1704_v39 = vcombine.low %v1612_v36, %v1614_v38 }
 0x1ed   : > { %v1616_v40 = vpop.f32.mrf.mxu0 }
 0x1ee   : > { %v1711_v42 = vrot.slane %v1704_v39, %v3197_v4 }
 0x1ef   : > { %v1617_v44 = vpop.f32.mrf.mxu0 }
 0x1f0   : > { %v1719_v45 = vcombine.low %v1711_v42, %v1718_v41  ;;  %1732 = sbr.rel (%p2252_p5) target bundleno = 526 (0x20e), region = 60 }
 0x1f2   : > { %v1725_v46 = vadd.f32 %v1719_v45, %v492_v43 }
 0x1f4   : > { %1728 = vst [vmem:[#allocation2 + $0x10] sm:$0x3f] %v1725_v46 }
 0x1f5   : > { %v1736_v48 = vld [vmem:[#allocation9] sm:$0xff]  ;;  %v1742_v49 = vsub.s32 0, %v3043_v47  ;;  %v1746_v50 = vsub.s32 1, %v3043_v47  ;;  %v3209_v51 = vsub.s32 2, %v3043_v47  ;;  %v1754_v52 = vsub.s32 3, %v3043_v47  ;;  %v1840_v53 = vld [vmem:[#allocation8] sm:$0xff] }
 0x1f6   : > { %v1758_v54 = vsub.s32 4, %v3043_v47  ;;  %v1762_v55 = vsub.s32 5, %v3043_v47  ;;  %v1766_v56 = vsub.s32 6, %v3043_v47  ;;  %v1770_v57 = vsub.s32 7, %v3043_v47  ;;  %v1737_v15 = vld [vmem:[#allocation9 + $0x8] sm:$0x7] }
 0x1f7   : > { %v1743_v58 = vrot.slane %v1736_v48, %v1742_v49  ;;  %v1747_v60 = vrot.slane %v1736_v48, %v1746_v50  ;;  %v1751_v61 = vrot.slane %v1736_v48, %v3209_v51  ;;  %v1755_v62 = vrot.slane %v1736_v48, %v1754_v52  ;;  %v1733_v16 = vld [vmem:[#allocation2] sm:$0xff]  ;;  %v1734_v30 = vld [vmem:[#allocation2 + $0x8] sm:$0xff] }
 0x1f8   : > { %v1847_v63 = vrot.slane %v1840_v53, %v1742_v49  ;;  %v1851_v0 = vrot.slane %v1840_v53, %v1746_v50  ;;  %v1855_v1 = vrot.slane %v1840_v53, %v3209_v51  ;;  %v1859_v2 = vrot.slane %v1840_v53, %v1754_v52  ;;  %v1841_v25 = vld [vmem:[#allocation8 + $0x8] sm:$0x7] }
 0x1f9   : > { %v1784_v3 = vcombine.low %v1743_v58, %v1747_v60  ;;  %v1785_v5 = vcombine.low %v1751_v61, %v1755_v62  ;;  %v1759_v6 = vrot.slane %v1736_v48, %v1758_v54  ;;  %v1763_v7 = vrot.slane %v1736_v48, %v1762_v55 }
 0x1fa   : > { %v1888_v8 = vcombine.low %v1847_v63, %v1851_v0  ;;  %v1889_v9 = vcombine.low %v1855_v1, %v1859_v2  ;;  %v1767_v10 = vrot.slane %v1736_v48, %v1766_v56  ;;  %v1771_v11 = vrot.slane %v1736_v48, %v1770_v57 }
 0x1fb   : > { %v1792_v47 = vrot.slane %v1784_v3, %v3197_v4  ;;  %v1799_v13 = vrot.slane %v1785_v5, %v3197_v4  ;;  %v1801_v14 = vcombine.low %v1759_v6, %v1763_v7  ;;  %v1863_v12 = vrot.slane %v1840_v53, %v1758_v54  ;;  %v1735_v52 = vld [vmem:[#allocation2 + $0x10] sm:$0x3f] }
 0x1fc   : > { %v1896_v17 = vrot.slane %v1888_v8, %v3197_v4  ;;  %v1903_v18 = vrot.slane %v1889_v9, %v3197_v4  ;;  %v1802_v19 = vcombine.low %v1767_v10, %v1771_v11  ;;  %v1867_v20 = vrot.slane %v1840_v53, %v1762_v55 }
 0x1fd   : > { %v1800_v21 = vcombine.low %v1792_v47, %v1799_v13  ;;  %v1809_v22 = vrot.slane %v1801_v14, %v3197_v4  ;;  %v1871_v23 = vrot.slane %v1840_v53, %v1766_v56  ;;  %v1875_v24 = vrot.slane %v1840_v53, %v1770_v57 }
 0x1fe   : > { %v1904_v26 = vcombine.low %v1896_v17, %v1903_v18  ;;  %v1816_v27 = vrot.slane %v1802_v19, %v3197_v4  ;;  %v1905_v28 = vcombine.low %v1863_v12, %v1867_v20  ;;  %v1775_v29 = vrot.slane %v1737_v15, %v1742_v49 }
 0x1ff   : > { %v1837_v59 = vmul.f32 %v1800_v21, %v1733_v16  ;;  %v1906_v31 = vcombine.low %v1871_v23, %v1875_v24  ;;  %v1779_v32 = vrot.slane %v1737_v15, %v1746_v50  ;;  %v1783_v33 = vrot.slane %v1737_v15, %v3209_v51 }
 0x200   : > { %v1817_v34 = vcombine.low %v1809_v22, %v1816_v27  ;;  %v1913_v35 = vrot.slane %v1905_v28, %v3197_v4  ;;  %v1879_v36 = vrot.slane %v1841_v25, %v1742_v49  ;;  %v1883_v37 = vrot.slane %v1841_v25, %v1746_v50 }
 0x201   : > { %v1941_v38 = vadd.f32 %v1904_v26, %v1837_v59  ;;  %v1920_v39 = vrot.slane %v1906_v31, %v3197_v4  ;;  %v1818_v40 = vcombine.low %v1775_v29, %v1779_v32  ;;  %v1832_v41 = vrot.slane %v1783_v33, %v3197_v4 }
 0x202   : > { %v1838_v42 = vmul.f32 %v1817_v34, %v1734_v30  ;;  %v1887_v43 = vrot.slane %v1841_v25, %v3209_v51  ;;  %v1922_v44 = vcombine.low %v1879_v36, %v1883_v37 }
 0x203   : > { %v1944_v45 = vmax.f32 %v1941_v38, 0.0  ;;  %v1921_v46 = vcombine.low %v1913_v35, %v1920_v39  ;;  %v1825_v48 = vrot.slane %v1818_v40, %v3197_v4 }
 0x204   : > { %v1929_v53 = vrot.slane %v1922_v44, %v3197_v4  ;;  %v1936_v49 = vrot.slane %v1887_v43, %v3197_v4 }
 0x205   : > { %1947 = vst [vmem:[#allocation11] sm:$0xff] %v1944_v45  ;;  %v1942_v50 = vadd.f32 %v1921_v46, %v1838_v42  ;;  %v1833_v54 = vcombine.low %v1825_v48, %v1832_v41 }
 0x206   : > { %v1937_v55 = vcombine.low %v1929_v53, %v1936_v49 }
 0x207   : > { %v1945_v56 = vmax.f32 %v1942_v50, 0.0  ;;  %v1839_v57 = vmul.f32 %v1833_v54, %v1735_v52 }
 0x209   : > { %1948 = vst [vmem:[#allocation11 + $0x8] sm:$0xff] %v1945_v56  ;;  %v1943_v58 = vadd.f32 %v1937_v55, %v1839_v57 }
 0x20b   : > { %v1946_v60 = vmax.f32 %v1943_v58, 0.0 }
 0x20d   : > { %1949 = vst [vmem:[#allocation11 + $0x10] sm:$0x3f] %v1946_v60 }
 0x20e PF: > { %p2321_p3 = scmp.eq.s32.totalorder %s2898_s21, 2  ;;  %s2843_s18 = smov [#allocation11]  }
 0x20f   : > { %s1960_s9 = sshll.u32 %s2843_s18, 4  ;;  %s1961_s9 = int_to_ptr.vmem [resolvable:$true] %s1960_s9 }
 0x210   : > { %s2742_s11 = scalar_lea.vmem %s1961_s9, 352  ;;  %p2749_p8 = scmp.lt.s32.totalorder %s1961_s9, %s1961_s9 }
 0x211   : > { %p2743_p2 = scmp.ne.s32.totalorder %s1961_s9, %s2742_s11  ;;  %p2750_p9 = scmp.lt.s32.totalorder %s2742_s11, %s2742_s11 }
 0x213   : > { %p2744_p7 = pnand %p2743_p2, %p2321_p3  ;;  %p2751_p4 = por %p2750_p9, %p2749_p8 }
 0x215   : > { %p2745_p6 = pneg %p2744_p7 }
 0x217   : > { %p2752_p13 = pnand %p2751_p4, %p2745_p6 }
 0x219   : > { %2755 = shalt.err (!%p2752_p13)
}
 0x21a   : > { %2297 = dma.vmem_to_hbm [thread:$0]  (%p2321_p3), %s1961_s9, 352, %s3266_s4, [#allocation5]  }
 0x21b   : > { %2807 = dma.done.wait (%p2321_p3), [#allocation5], 352  }
 0x21c   : > { %2809 = vsyncadd (%p2321_p3), [#allocation5], 4294966944 }
 0x21d PF: > { %s20_s20 = sadd.s32 1, %s2832_s20   ;;  %s3282_s15 = smov %s2816_s16 }
 0x21e   : > { %p17_p12 = scmp.ge.s32.totalorder %s20_s20, 5   ;;  %s3283_s16 = smov %s2820_s17 }
 0x21f   : > { %s3284_s17 = smov %s2971_s13  ;;  %s3285_s18 = smov %s2828_s19 }
 0x220   : > { %s3286_s19 = smov %s3288_s29  ;;  %19 = sbr.rel (!%p17_p12) target bundleno = 7 (0x7), region = 98 }
 0x225   :  { %1973 = vsyncpa [#allocation4], 1 }
 0x226   :  { %1975 = vsyncpa [#allocation4 + $0x1], 1 }
 0x227   :  { %1976 = vsyncpa [#allocation7], 1 }
 0x228   :  { %1978 = vsyncpa [#allocation7 + $0x1], 1 }
 0x229   :  { %1979 = vsyncpa [#allocation10], 1 }
 0x22a   :  { %1980 = vsyncpa [#allocation5], 1 }
 0x22b   :  { %1982 = vsyncpa [#allocation5 + $0x1], 1 }

</bundles_post_ra>
